<compile_context>
chip_gen: v7x
topology: tpu7x:2x2x1
jax: 0.10.0
libtpu: 0.0.40
codegen_flags: <defaults>
</compile_context>

<pallas_src>
import jax
import jax.numpy as jnp
from jax.experimental import pallas as pl
from jax.experimental.pallas import tpu as pltpu

LANES = 128


def _round_up(x: int, m: int) -> int:
    return ((x + m - 1) // m) * m


def _binary_classifier_kernel(wb_ref, x_ref, o_ref):
    # wb_ref: (3,) f32 in SMEM  -> w0, w1, b scalars
    # x_ref : (2, tile_rows, 128) f32, lane-dense (feature, sublane-row, lane)
    # o_ref : (tile_rows, 128) f32
    w0 = wb_ref[0]
    w1 = wb_ref[1]
    b = wb_ref[2]
    logits = x_ref[0] * w0 + x_ref[1] * w1 + b   # pure VPU FMAs, no MXU
    o_ref[...] = jax.nn.sigmoid(logits)          # exp -> EUP


def binary_classifier(x, weight, bias, tile_rows=512):
    """Forward pass of BinaryClassifier: sigmoid(x @ weight.T + bias).

    x:      (N, 2) float
    weight: (1, 2) float  (PyTorch nn.Linear layout)
    bias:   (1,)   float
    returns (N, 1) float32
    """
    n, f = x.shape
    assert f == 2, "BinaryClassifier expects 2 input features"

    # --- lane-dense relayout (plain-JAX glue, outside the kernel) -------------
    rows_needed = pl.cdiv(n, LANES)                       # sublane rows required
    tile_rows = min(tile_rows, _round_up(rows_needed, 8)) # keep (8,128)-aligned blocks
    total_rows = _round_up(rows_needed, tile_rows)
    n_pad = total_rows * LANES

    x_t = x.astype(jnp.float32).T                          # (2, N), batch -> lanes
    x_pad = jnp.zeros((f, n_pad), jnp.float32).at[:, :n].set(x_t)
    x_slab = x_pad.reshape(f, total_rows, LANES)           # (2, total_rows, 128)

    # weight + bias as SMEM scalars via scalar prefetch
    wb = jnp.concatenate(
        [weight.reshape(-1), bias.reshape(-1)]).astype(jnp.float32)  # (3,)

    grid = (total_rows // tile_rows,)

    out_slab = pl.pallas_call(
        _binary_classifier_kernel,
        out_shape=jax.ShapeDtypeStruct((total_rows, LANES), jnp.float32),
        grid_spec=pltpu.PrefetchScalarGridSpec(
            num_scalar_prefetch=1,                         # wb -> SMEM
            grid=grid,
            in_specs=[
                pl.BlockSpec((f, tile_rows, LANES), lambda i, wb: (0, i, 0)),
            ],
            out_specs=pl.BlockSpec((tile_rows, LANES), lambda i, wb: (i, 0)),
        ),
        compiler_params=pltpu.CompilerParams(
            dimension_semantics=("parallel",),             # v7x dual-TC shards batch tiles
        ),
    )(wb, x_slab)

    # undo the lane-dense layout: row-major (rows, 128) flatten == batch order
    return out_slab.reshape(-1)[:n].reshape(n, 1)


if __name__ == "__main__":
    key = jax.random.PRNGKey(0)
    kx, kw, kb, kx2 = jax.random.split(key, 4)

    in_features, out_features = 2, 1
    weight = jax.random.normal(kw, (out_features, in_features), dtype=jnp.float32) * 0.5
    bias = jax.random.normal(kb, (out_features,), dtype=jnp.float32) * 0.1

    # Small batch (matches the lab's toy setting).
    batch = 8
    x = jax.random.normal(kx, (batch, in_features), dtype=jnp.float32)
    out = jax.block_until_ready(binary_classifier(x, weight, bias))
    ref = jax.nn.sigmoid(x @ weight.T + bias)
    assert out.shape == (batch, 1)
    assert jnp.allclose(out, ref, atol=1e-6), (out, ref)

    # Larger batch with a small tile to exercise the multi-step, double-buffered grid.
    batch2 = 3000
    x2 = jax.random.normal(kx2, (batch2, in_features), dtype=jnp.float32)
    out2 = jax.block_until_ready(binary_classifier(x2, weight, bias, tile_rows=8))
    ref2 = jax.nn.sigmoid(x2 @ weight.T + bias)
    assert out2.shape == (batch2, 1)
    assert jnp.allclose(out2, ref2, atol=1e-6), "large-batch mismatch"

    print("KERNEL_OK")
</pallas_src>

<mosaic_0001>
module attributes {stable_mosaic.version = 11 : i64} {
  func.func @_binary_classifier_kernel(%arg0: i32, %arg1: memref<3xf32, #tpu.memory_space<smem>>, %arg2: memref<2x8x128xf32, #tpu.memory_space<vmem>>, %arg3: memref<8x128xf32, #tpu.memory_space<vmem>>) attributes {dimension_semantics = [#tpu.dimension_semantics<parallel>], iteration_bounds = array<i64: 1>, scalar_prefetch = 1 : i64, scratch_operands = 0 : i64, tpu.core_type = #tpu.core_type<tc>, window_params = [{transform_indices = @transform_0, window_bounds = array<i64: 2, 8, 128>}, {transform_indices = @transform_1, window_bounds = array<i64: 8, 128>}]} {
    %c0 = arith.constant 0 : index
    %0 = memref.load %arg1[%c0] : memref<3xf32, #tpu.memory_space<smem>>
    %c1 = arith.constant 1 : index
    %1 = memref.load %arg1[%c1] : memref<3xf32, #tpu.memory_space<smem>>
    %c2 = arith.constant 2 : index
    %2 = memref.load %arg1[%c2] : memref<3xf32, #tpu.memory_space<smem>>
    %c0_0 = arith.constant 0 : index
    %c0_1 = arith.constant 0 : index
    %c0_2 = arith.constant 0 : index
    %3 = vector.load %arg2[%c0_0, %c0_1, %c0_2] : memref<2x8x128xf32, #tpu.memory_space<vmem>>, vector<1x8x128xf32>
    %4 = vector.shape_cast %3 : vector<1x8x128xf32> to vector<8x128xf32>
    %5 = vector.broadcast %0 : f32 to vector<8x128xf32>
    %6 = arith.mulf %4, %5 : vector<8x128xf32>
    %c1_3 = arith.constant 1 : index
    %c0_4 = arith.constant 0 : index
    %c0_5 = arith.constant 0 : index
    %7 = vector.load %arg2[%c1_3, %c0_4, %c0_5] : memref<2x8x128xf32, #tpu.memory_space<vmem>>, vector<1x8x128xf32>
    %8 = vector.shape_cast %7 : vector<1x8x128xf32> to vector<8x128xf32>
    %9 = vector.broadcast %1 : f32 to vector<8x128xf32>
    %10 = arith.mulf %8, %9 : vector<8x128xf32>
    %11 = arith.addf %6, %10 : vector<8x128xf32>
    %12 = vector.broadcast %2 : f32 to vector<8x128xf32>
    %13 = arith.addf %11, %12 : vector<8x128xf32>
    %14 = arith.negf %13 : vector<8x128xf32>
    %15 = math.exp %14 : vector<8x128xf32>
    %cst = arith.constant 1.000000e+00 : f32
    %16 = vector.broadcast %cst : f32 to vector<8x128xf32>
    %17 = arith.addf %16, %15 : vector<8x128xf32>
    %18 = arith.divf %16, %17 : vector<8x128xf32>
    %c0_6 = arith.constant 0 : index
    %c0_7 = arith.constant 0 : index
    %19 = vector.load %arg3[%c0_6, %c0_7] : memref<8x128xf32, #tpu.memory_space<vmem>>, vector<8x128xf32>
    tpu.vector_store %arg3[%c0_6, %c0_7], %18 {strides = array<i32>} : memref<8x128xf32, #tpu.memory_space<vmem>>, vector<8x128xf32>,
    return
  }
  func.func @transform_0(%arg0: i32, %arg1: memref<3xf32, #tpu.memory_space<smem>>) -> (i32, i32, i32) {
    %c0_i32 = arith.constant 0 : i32
    %c0_i32_0 = arith.constant 0 : i32
    %c0_i32_1 = arith.constant 0 : i32
    return %c0_i32, %arg0, %c0_i32_0 : i32, i32, i32
  }
  func.func @transform_1(%arg0: i32, %arg1: memref<3xf32, #tpu.memory_space<smem>>) -> (i32, i32) {
    %c0_i32 = arith.constant 0 : i32
    %c0_i32_0 = arith.constant 0 : i32
    return %arg0, %c0_i32 : i32, i32
  }
}

</mosaic_0001>

<bundles_post_ra>
// kernel: tpu_custom_call.1
= control target key start
LH: loop header
LB: loop body
LE: loop exit
PB: predicated region body
PF: predicated region fallthrough
CT: control target
= control target key end

     0   :  { %s191_s0 = inlined_call_operand.hbm [shape: f32[3], index: 0, kind: input, shape index: {}]   ;;  %s192_s1 = inlined_call_operand.hbm [shape: f32[2,8,128], index: 1, kind: input, shape index: {}]   ;;  %s193_s2 = inlined_call_operand.hbm [shape: f32[8,128], index: 2, kind: output, shape index: {}]  }
   0x1   :  { %s75_s11 = scalar_lea.hbm %s191_s0, 16 }
   0x2   :  { %p76_p0 = scmp.ne.s32.totalorder %s191_s0, %s75_s11  ;;  %p79_p1 = scmp.lt.u32.totalorder %s75_s11, %s191_s0 }
   0x4   :  { %p81_p2 = pnand %p79_p1, %p76_p0 }
   0x6   :  { %84 = shalt.err (!%p81_p2)  }
   0x7   :  { %s135_s16 = smov [#allocation3]  }
   0x8   :  { %8 = dma.hbm_to_smem %s191_s0, 16, %s135_s16, [#allocation2] }
   0x9   :  { %129 = dma.done.wait [#allocation2], 16 }
   0xa   :  { %130 = vsyncadd [#allocation2], 4294967280 }
   0xb   :  { %10 = sfence }
   0xc   :  { %11 = vsyncpa [#allocation5], 0 }
   0xd   :  { %12 = vsyncpa [#allocation6], 0  ;;  %s136_s19 = smov [#allocation4]   ;;  %s85_s23 = scalar_lea.hbm %s192_s1, 256 }
   0xe   :  { %s18_s20 = sshll.u32 %s136_s19, 4  ;;  %p86_p3 = scmp.ne.s32.totalorder %s192_s1, %s85_s23  ;;  %s19_s20 = int_to_ptr.vmem [resolvable:$true] %s18_s20 }
   0xf   :  { %p89_p4 = scmp.lt.u32.totalorder %s85_s23, %s192_s1 }
  0x11   :  { %p91_p5 = pnand %p89_p4, %p86_p3 }
  0x13   :  { %94 = shalt.err (!%p91_p5)
}
  0x14   :  { %s95_s0 = scalar_lea.vmem %s19_s20, 256  ;;  %p100_p7 = scmp.lt.s32.totalorder %s19_s20, %s19_s20 }
  0x15   :  { %p96_p6 = scmp.ne.s32.totalorder %s19_s20, %s95_s0  ;;  %p101_p8 = scmp.lt.s32.totalorder %s95_s0, %s95_s0 }
  0x17   :  { %p102_p9 = por %p101_p8, %p100_p7 }
  0x19   :  { %p103_p10 = pnand %p102_p9, %p96_p6 }
  0x1b   :  { %106 = shalt.err (!%p103_p10)
}
  0x1c   :  { %s137_s28 = smov 128   ;;  %s138_s29 = smov 8  }
  0x1d   :  { %24 = dma.hbm_to_vmem [thread:$0]  %s192_s1, 256, %s19_s20, [#allocation5], %s137_s28, %s137_s28, %s138_s29  }
  0x1e   :  { %131 = dma.done.wait [#allocation5], 256  }
  0x1f   :  { %132 = vsyncadd [#allocation5], 4294967040  ;;  %s28_s4 = sld [smem:[#allocation3]]  ;;  %s63_s5 = sld [smem:[#allocation3 + $0x1]]  ;;  %v31_v0 = vld [vmem:[#allocation4] sm:$0xff]  ;;  %v35_v2 = vld [vmem:[#allocation4 + $0x8] sm:$0xff] }
  0x20   :  { %s64_s6 = sld [smem:[#allocation3 + $0x2]]  ;;  %s139_s1 = smov [#allocation7]  }
  0x21   :  { %s54_s7 = sshll.u32 %s139_s1, 4  ;;  %s55_s7 = int_to_ptr.vmem [resolvable:$true] %s54_s7 }
  0x22   :  { %s107_s8 = scalar_lea.vmem %s55_s7, 128  ;;  %p112_p12 = scmp.lt.s32.totalorder %s55_s7, %s55_s7 }
  0x23   :  { %p108_p11 = scmp.ne.s32.totalorder %s55_s7, %s107_s8  ;;  %p113_p13 = scmp.lt.s32.totalorder %s107_s8, %s107_s8 }
  0x25   :  { %v32_v1 = vstv %s28_s4  ;;  %v36_v3 = vstv %s63_s5  ;;  %p114_p0 = por %p113_p13, %p112_p12 }
  0x26   :  { %v33_v4 = vmul.f32 %v32_v1, %v31_v0  ;;  %v37_v5 = vmul.f32 %v36_v3, %v35_v2  ;;  %v39_v6 = vstv %s64_s6 }
  0x27   :  { %p115_p1 = pnand %p114_p0, %p108_p11 }
  0x28   :  { %v38_v7 = vadd.f32 %v37_v5, %v33_v4 }
  0x2a   :  { %v40_v8 = vadd.f32 %v39_v6, %v38_v7 }
  0x2c   :  { %v65_v9 = vmul.f32 -1.442695, %v40_v8 }
  0x2e   :  { %71 = vpow2.f32 %v65_v9 }
  0x38   :  { %v72_v10 = vpop.eup %71 }
  0x39   :  { %v44_v11 = vadd.f32 1.0, %v72_v10 }
  0x3b   :  { %73 = vrcp.f32 %v44_v11 }
  0x45   :  { %v74_v12 = vpop.eup %73 }
  0x46   :  { %47 = vst [vmem:[#allocation7] sm:$0xff] %v74_v12 }
  0x47   :  { %118 = shalt.err (!%p115_p1)
}
  0x48   :  { %s119_s11 = scalar_lea.hbm %s193_s2, 128 }
  0x49   :  { %p120_p2 = scmp.ne.s32.totalorder %s193_s2, %s119_s11  ;;  %p123_p3 = scmp.lt.u32.totalorder %s119_s11, %s193_s2 }
  0x4b   :  { %p125_p4 = pnand %p123_p3, %p120_p2 }
  0x4d   :  { %128 = shalt.err (!%p125_p4)
}
  0x4e   :  { %57 = dma.vmem_to_hbm [thread:$0]  %s55_s7, 128, %s193_s2, [#allocation6]  }
  0x4f   :  { %133 = dma.done.wait [#allocation6], 128  }
  0x50   :  { %134 = vsyncadd [#allocation6], 4294967168 }
  0x51   :  { %61 = vsyncpa [#allocation5], 1 }
  0x52   :  { %62 = vsyncpa [#allocation6], 1 }

</bundles_post_ra>
